<compile_context>
chip_gen: v6e
topology: v6e:2x2x1
jax: 0.10.0
libtpu: 0.0.40
codegen_flags: <defaults>
</compile_context>

<pallas_src>
import functools

import jax
import jax.numpy as jnp
import numpy as np
from jax import lax
from jax.experimental import pallas as pl
from jax.experimental.pallas import tpu as pltpu

BN_EPS = 1e-5
OUT_LANES = 128  # lane-dense output slab width (one full vreg of lanes)


# --------------------------------------------------------------------------
# Kernel: one grid step == one LoanModelBlock3; front-end at b==0, head at
# b==num_blocks-1.  x is carried across grid steps in a VMEM scratch.
# --------------------------------------------------------------------------
def _loan_kernel(feat_ref, win_ref, rows_ref, b1_ref, w1_ref, w2_ref,
                 wout_ref, bout_ref, out_ref, x_scr, *, batch):
    b = pl.program_id(0)
    nb = pl.num_programs(0)
    inv_b = 1.0 / batch  # static python float

    @pl.when(b == 0)
    def _():
        # x = cat([emb1..emb4, numeric_linear(num)], -1) realized as a single
        # matmul against the prepared [[I, 0], [0, Wnum^T (+bias row)]] weight.
        x_scr[...] = jnp.dot(feat_ref[...], win_ref[...],
                             preferred_element_type=jnp.float32)

    x = x_scr[...]

    # ---- LoanModelBlock3: BN (training-mode batch stats) -> linear1 -> ReLU
    # ---- -> linear2 -> + skip
    rows = rows_ref[0]                              # (3, H): gamma, beta, b2
    gamma, beta, b2 = rows[0:1], rows[1:2], rows[2:3]

    # One-pass batch stats (biased variance, as PyTorch uses to normalize),
    # then fold gamma/beta/mean/var into a per-feature scale & shift.
    s = jnp.sum(x, axis=0, keepdims=True)
    sq = jnp.sum(x * x, axis=0, keepdims=True)
    mean = s * inv_b
    var = jnp.maximum(sq * inv_b - mean * mean, 0.0)
    scale = gamma * lax.rsqrt(var + BN_EPS)         # (1, H)
    shift = beta - mean * scale                     # (1, H)
    xbn = x * scale + shift                         # (B, H)

    w1 = w1_ref[0]                                  # (H, 4H), bf16 or f32
    hdn = jnp.dot(xbn.astype(w1.dtype), w1,
                  preferred_element_type=jnp.float32) + b1_ref[0]
    hdn = jnp.maximum(hdn, 0.0)

    w2 = w2_ref[0]                                  # (4H, H), bf16 or f32
    y = jnp.dot(hdn.astype(w2.dtype), w2,
                preferred_element_type=jnp.float32) + b2

    x_new = x + y
    x_scr[...] = x_new

    @pl.when(b == nb - 1)
    def _():
        # linear_out (H -> 1): VPU multiply + XLU lane reduction (MXU-free),
        # broadcast into a lane-dense slab so the store is an unmasked vst.
        r = (jnp.sum(x_new * wout_ref[...], axis=-1, keepdims=True)
             + bout_ref[0, 0])                      # (B, 1)
        out_ref[...] = jnp.broadcast_to(r, out_ref.shape)


# --------------------------------------------------------------------------
# Raw parameters in PyTorch orientation (Linear weights are (out, in)).
# --------------------------------------------------------------------------
def init_params(key, hidden_size, num_blocks):
    h, h8, h2, h4 = hidden_size, hidden_size // 8, hidden_size // 2, hidden_size * 4
    ks = jax.random.split(key, 16)
    return {
        "emb1": jax.random.normal(ks[0], (4, h8), jnp.float32),
        "emb2": jax.random.normal(ks[1], (6, h8), jnp.float32),
        "emb3": jax.random.normal(ks[2], (7, h8), jnp.float32),
        "emb4": jax.random.normal(ks[3], (2, h8), jnp.float32),
        "wnum": jax.random.normal(ks[4], (h2, 7), jnp.float32) * 0.3,
        "bnum": jax.random.normal(ks[5], (h2,), jnp.float32) * 0.1,
        "gamma": 1.0 + 0.1 * jax.random.normal(ks[6], (num_blocks, h), jnp.float32),
        "beta": 0.1 * jax.random.normal(ks[7], (num_blocks, h), jnp.float32),
        "w1": jax.random.normal(ks[8], (num_blocks, h4, h), jnp.float32) * 0.1,
        "b1": jax.random.normal(ks[9], (num_blocks, h4), jnp.float32) * 0.1,
        "w2": jax.random.normal(ks[10], (num_blocks, h, h4), jnp.float32) * 0.1,
        "b2": jax.random.normal(ks[11], (num_blocks, h), jnp.float32) * 0.1,
        "wout": jax.random.normal(ks[12], (1, h), jnp.float32) * 0.1,
        "bout": jax.random.normal(ks[13], (1,), jnp.float32) * 0.1,
    }


# --------------------------------------------------------------------------
# One-time parameter preparation (hoisted out of the per-call hot path).
# --------------------------------------------------------------------------
def prepare_params(params, *, hidden_size, num_blocks, matmul_dtype=jnp.bfloat16):
    h = hidden_size
    h2 = h // 2
    k_in = h2 + 8  # [emb (H/2) | 7 numeric features | constant 1.0]

    # Front-end weight: identity passes the embeddings through to the left
    # half; numeric weights (+ bias via the ones column) fill the right half.
    win = jnp.zeros((k_in, h), jnp.float32)
    win = win.at[:h2, :h2].set(jnp.eye(h2, dtype=jnp.float32))
    win = win.at[h2:h2 + 7, h2:].set(params["wnum"].T)
    win = win.at[h2 + 7, h2:].set(params["bnum"])

    rows = jnp.stack([params["gamma"], params["beta"], params["b2"]],
                     axis=1).astype(jnp.float32)                 # (NB, 3, H)

    return {
        "emb1": params["emb1"], "emb2": params["emb2"],
        "emb3": params["emb3"], "emb4": params["emb4"],
        "win": win,                                              # (K_in, H)
        "rows": rows,                                            # (NB, 3, H)
        "b1": params["b1"][:, None, :].astype(jnp.float32),      # (NB, 1, 4H)
        "w1": jnp.transpose(params["w1"], (0, 2, 1)).astype(matmul_dtype),  # (NB, H, 4H)
        "w2": jnp.transpose(params["w2"], (0, 2, 1)).astype(matmul_dtype),  # (NB, 4H, H)
        "wout": params["wout"].astype(jnp.float32),              # (1, H)
        "bout": params["bout"].reshape(1, 1).astype(jnp.float32),
        "num_blocks": num_blocks,
        "hidden_size": hidden_size,
    }


# --------------------------------------------------------------------------
# Forward wrapper (per-call work: embedding gathers + one small concat only).
# --------------------------------------------------------------------------
def loan_forward_pallas(prep, num_features, cat_features):
    h = prep["hidden_size"]
    nb = prep["num_blocks"]
    h2, h4 = h // 2, h * 4
    k_in = h2 + 8

    # Embedding lookups (tiny data-dependent gathers) stay in JAX glue.
    x1 = prep["emb1"][cat_features["person_home_ownership"]]
    x2 = prep["emb2"][cat_features["loan_intent"]]
    x3 = prep["emb3"][cat_features["loan_grade"]]
    x4 = prep["emb4"][cat_features["cb_person_default_on_file"]]
    num_stacked = jnp.stack(list(num_features.values()), axis=-1)     # (B, 7)
    B = num_stacked.shape[0]
    feat = jnp.concatenate(
        [x1, x2, x3, x4, num_stacked, jnp.ones((B, 1), jnp.float32)],
        axis=-1)                                                      # (B, K_in)

    grid_spec = pltpu.PrefetchScalarGridSpec(
        num_scalar_prefetch=0,
        grid=(nb,),                                  # one step per residual block
        in_specs=[
            pl.BlockSpec((B, k_in), lambda b: (0, 0)),       # feat (resident)
            pl.BlockSpec((k_in, h), lambda b: (0, 0)),       # front-end weight
            pl.BlockSpec((1, 3, h), lambda b: (b, 0, 0)),    # gamma/beta/b2 (streamed)
            pl.BlockSpec((1, 1, h4), lambda b: (b, 0, 0)),   # b1 (streamed)
            pl.BlockSpec((1, h, h4), lambda b: (b, 0, 0)),   # w1 (streamed, dbl-buffered)
            pl.BlockSpec((1, h4, h), lambda b: (b, 0, 0)),   # w2 (streamed, dbl-buffered)
            pl.BlockSpec((1, h), lambda b: (0, 0)),          # wout row
            pl.BlockSpec(memory_space=pltpu.MemorySpace.SMEM),  # bout scalar
        ],
        out_specs=pl.BlockSpec((B, OUT_LANES), lambda b: (0, 0)),
        scratch_shapes=[pltpu.VMEM((B, h), jnp.float32)],    # x carried across blocks
    )

    out_slab = pl.pallas_call(
        functools.partial(_loan_kernel, batch=B),
        out_shape=jax.ShapeDtypeStruct((B, OUT_LANES), jnp.float32),
        grid_spec=grid_spec,
        compiler_params=pltpu.CompilerParams(
            # x is carried across block steps -> the grid axis is sequential.
            dimension_semantics=("arbitrary",)),
    )(feat, prep["win"], prep["rows"], prep["b1"], prep["w1"], prep["w2"],
      prep["wout"], prep["bout"])

    return out_slab[:, 0]  # result.view(-1)


# --------------------------------------------------------------------------
# Pure-JAX reference (mirrors the PyTorch module, f32).
# --------------------------------------------------------------------------
def loan_forward_reference(params, num_features, cat_features, *, num_blocks):
    x1 = params["emb1"][cat_features["person_home_ownership"]]
    x2 = params["emb2"][cat_features["loan_intent"]]
    x3 = params["emb3"][cat_features["loan_grade"]]
    x4 = params["emb4"][cat_features["cb_person_default_on_file"]]
    num_stacked = jnp.stack(list(num_features.values()), axis=-1)
    x_num = num_stacked @ params["wnum"].T + params["bnum"]
    x = jnp.concatenate([x1, x2, x3, x4, x_num], axis=-1)
    for b in range(num_blocks):
        skip = x
        mean = x.mean(axis=0, keepdims=True)
        var = ((x - mean) ** 2).mean(axis=0, keepdims=True)
        xbn = (x - mean) / jnp.sqrt(var + BN_EPS) * params["gamma"][b] + params["beta"][b]
        hdn = jnp.maximum(xbn @ params["w1"][b].T + params["b1"][b], 0.0)
        x = hdn @ params["w2"][b].T + params["b2"][b] + skip
    return (x @ params["wout"].T + params["bout"]).reshape(-1)


if __name__ == "__main__":
    HIDDEN = 32
    NUM_BLOCKS = 2
    B = 8

    key = jax.random.PRNGKey(0)
    k_params, k_num, k_c1, k_c2, k_c3, k_c4 = jax.random.split(key, 6)
    params = init_params(k_params, HIDDEN, NUM_BLOCKS)

    num_keys = ["person_age", "person_income", "person_emp_length", "loan_amnt",
                "loan_int_rate", "loan_percent_income", "cb_person_cred_hist_length"]
    num_vals = jax.random.normal(k_num, (7, B), jnp.float32)
    num_features = {name: num_vals[i] for i, name in enumerate(num_keys)}
    cat_features = {
        "person_home_ownership": jax.random.randint(k_c1, (B,), 0, 4),
        "loan_intent": jax.random.randint(k_c2, (B,), 0, 6),
        "loan_grade": jax.random.randint(k_c3, (B,), 0, 7),
        "cb_person_default_on_file": jax.random.randint(k_c4, (B,), 0, 2),
    }

    ref = loan_forward_reference(params, num_features, cat_features,
                                 num_blocks=NUM_BLOCKS)

    # f32 MXU path: tight correctness check.
    prep_f32 = prepare_params(params, hidden_size=HIDDEN, num_blocks=NUM_BLOCKS,
                              matmul_dtype=jnp.float32)
    out_f32 = jax.block_until_ready(
        loan_forward_pallas(prep_f32, num_features, cat_features))
    np.testing.assert_allclose(np.asarray(out_f32), np.asarray(ref),
                               rtol=1e-3, atol=1e-3)

    # bf16 weights / f32 accumulate (recommended for v5e/v6e/v7x MXU): loose check.
    prep_bf16 = prepare_params(params, hidden_size=HIDDEN, num_blocks=NUM_BLOCKS,
                               matmul_dtype=jnp.bfloat16)
    out_bf16 = jax.block_until_ready(
        loan_forward_pallas(prep_bf16, num_features, cat_features))
    np.testing.assert_allclose(np.asarray(out_bf16), np.asarray(ref),
                               rtol=5e-2, atol=5e-2)

    assert out_f32.shape == (B,) and out_bf16.shape == (B,)
    print("KERNEL_OK")
</pallas_src>

<mosaic_0001>
module attributes {stable_mosaic.version = 11 : i64} {
  func.func @_loan_kernel(%arg0: i32, %arg1: memref<8x24xf32, #tpu.memory_space<vmem>>, %arg2: memref<24x32xf32, #tpu.memory_space<vmem>>, %arg3: memref<1x3x32xf32, #tpu.memory_space<vmem>>, %arg4: memref<1x1x128xf32, #tpu.memory_space<vmem>>, %arg5: memref<1x32x128xf32, #tpu.memory_space<vmem>>, %arg6: memref<1x128x32xf32, #tpu.memory_space<vmem>>, %arg7: memref<1x32xf32, #tpu.memory_space<vmem>>, %arg8: memref<1x1xf32, #tpu.memory_space<smem>>, %arg9: memref<8x128xf32, #tpu.memory_space<vmem>>, %arg10: memref<8x32xf32, #tpu.memory_space<vmem>>) attributes {dimension_semantics = [#tpu.dimension_semantics<arbitrary>], iteration_bounds = array<i64: 2>, scalar_prefetch = 0 : i64, scratch_operands = 1 : i64, tpu.core_type = #tpu.core_type<tc>, window_params = [{pipeline_mode = #tpu.pipeline_mode<synchronous>, transform_indices = @transform_0, window_bounds = array<i64: 8, 24>}, {pipeline_mode = #tpu.pipeline_mode<synchronous>, transform_indices = @transform_1, window_bounds = array<i64: 24, 32>}, {transform_indices = @transform_2, window_bounds = array<i64: 1, 3, 32>}, {transform_indices = @transform_3, window_bounds = array<i64: 1, 1, 128>}, {transform_indices = @transform_4, window_bounds = array<i64: 1, 32, 128>}, {transform_indices = @transform_5, window_bounds = array<i64: 1, 128, 32>}, {pipeline_mode = #tpu.pipeline_mode<synchronous>, transform_indices = @transform_6, window_bounds = array<i64: 1, 32>}, {transform_indices = @transform_7, window_bounds = array<i64: 1, 1>}, {pipeline_mode = #tpu.pipeline_mode<synchronous>, transform_indices = @transform_8, window_bounds = array<i64: 8, 128>}]} {
    %c0_i32 = arith.constant 0 : i32
    %0 = arith.cmpi eq, %arg0, %c0_i32 : i32
    %1 = arith.extui %0 : i1 to i32
    %c0_i32_0 = arith.constant 0 : i32
    %2 = arith.cmpi ne, %1, %c0_i32_0 : i32
    scf.if %2 {
      %c0_25 = arith.constant 0 : index
      %c0_26 = arith.constant 0 : index
      %51 = vector.load %arg1[%c0_25, %c0_26] : memref<8x24xf32, #tpu.memory_space<vmem>>, vector<8x24xf32>
      %c0_27 = arith.constant 0 : index
      %c0_28 = arith.constant 0 : index
      %52 = vector.load %arg2[%c0_27, %c0_28] : memref<24x32xf32, #tpu.memory_space<vmem>>, vector<24x32xf32>
      %cst_29 = arith.constant dense<0.000000e+00> : vector<8x32xf32>
      %53 = tpu.matmul %51, %52, %cst_29 {dimension_numbers = #tpu.dot_dimension_numbers<[1], [0], [0], [1], [0, 0, 1, 1], [], []>} : vector<8x24xf32>, vector<24x32xf32>, vector<8x32xf32> -> vector<8x32xf32>
      %c0_30 = arith.constant 0 : index
      %c0_31 = arith.constant 0 : index
      %54 = vector.load %arg10[%c0_30, %c0_31] : memref<8x32xf32, #tpu.memory_space<vmem>>, vector<8x32xf32>
      tpu.vector_store %arg10[%c0_30, %c0_31], %53 {strides = array<i32>} : memref<8x32xf32, #tpu.memory_space<vmem>>, vector<8x32xf32>,
    } else {
    }
    %c0 = arith.constant 0 : index
    %c0_1 = arith.constant 0 : index
    %3 = vector.load %arg10[%c0, %c0_1] : memref<8x32xf32, #tpu.memory_space<vmem>>, vector<8x32xf32>
    %c0_2 = arith.constant 0 : index
    %c0_3 = arith.constant 0 : index
    %c0_4 = arith.constant 0 : index
    %4 = vector.load %arg3[%c0_2, %c0_3, %c0_4] : memref<1x3x32xf32, #tpu.memory_space<vmem>>, vector<1x3x32xf32>
    %5 = vector.shape_cast %4 : vector<1x3x32xf32> to vector<3x32xf32>
    %6 = vector.extract_strided_slice %5 {offsets = [0, 0], sizes = [1, 32], strides = [1, 1]} : vector<3x32xf32> to vector<1x32xf32>
    %7 = vector.extract_strided_slice %5 {offsets = [1, 0], sizes = [1, 32], strides = [1, 1]} : vector<3x32xf32> to vector<1x32xf32>
    %8 = vector.extract_strided_slice %5 {offsets = [2, 0], sizes = [1, 32], strides = [1, 1]} : vector<3x32xf32> to vector<1x32xf32>
    %cst = arith.constant dense<0.000000e+00> : vector<32xf32>
    %9 = vector.multi_reduction <add>, %3, %cst [0] : vector<8x32xf32> to vector<32xf32>
    %10 = vector.shape_cast %9 : vector<32xf32> to vector<1x32xf32>
    %11 = arith.mulf %3, %3 : vector<8x32xf32>
    %cst_5 = arith.constant dense<0.000000e+00> : vector<32xf32>
    %12 = vector.multi_reduction <add>, %11, %cst_5 [0] : vector<8x32xf32> to vector<32xf32>
    %13 = vector.shape_cast %12 : vector<32xf32> to vector<1x32xf32>
    %cst_6 = arith.constant 1.250000e-01 : f32
    %14 = vector.broadcast %cst_6 : f32 to vector<1x32xf32>
    %15 = arith.mulf %10, %14 : vector<1x32xf32>
    %cst_7 = arith.constant 1.250000e-01 : f32
    %16 = vector.broadcast %cst_7 : f32 to vector<1x32xf32>
    %17 = arith.mulf %13, %16 : vector<1x32xf32>
    %18 = arith.mulf %15, %15 : vector<1x32xf32>
    %19 = arith.subf %17, %18 : vector<1x32xf32>
    %cst_8 = arith.constant 0.000000e+00 : f32
    %20 = vector.broadcast %cst_8 : f32 to vector<1x32xf32>
    %21 = arith.maximumf %19, %20 : vector<1x32xf32>
    %cst_9 = arith.constant 9.99999974E-6 : f32
    %22 = vector.broadcast %cst_9 : f32 to vector<1x32xf32>
    %23 = arith.addf %21, %22 : vector<1x32xf32>
    %24 = math.rsqrt %23 : vector<1x32xf32>
    %25 = arith.mulf %6, %24 : vector<1x32xf32>
    %26 = arith.mulf %15, %25 : vector<1x32xf32>
    %27 = arith.subf %7, %26 : vector<1x32xf32>
    %28 = vector.broadcast %25 : vector<1x32xf32> to vector<8x32xf32>
    %29 = arith.mulf %3, %28 : vector<8x32xf32>
    %30 = vector.broadcast %27 : vector<1x32xf32> to vector<8x32xf32>
    %31 = arith.addf %29, %30 : vector<8x32xf32>
    %c0_10 = arith.constant 0 : index
    %c0_11 = arith.constant 0 : index
    %c0_12 = arith.constant 0 : index
    %32 = vector.load %arg5[%c0_10, %c0_11, %c0_12] : memref<1x32x128xf32, #tpu.memory_space<vmem>>, vector<1x32x128xf32>
    %33 = vector.shape_cast %32 : vector<1x32x128xf32> to vector<32x128xf32>
    %cst_13 = arith.constant dense<0.000000e+00> : vector<8x128xf32>
    %34 = tpu.matmul %31, %33, %cst_13 {dimension_numbers = #tpu.dot_dimension_numbers<[1], [0], [0], [1], [0, 0, 1, 1], [], []>} : vector<8x32xf32>, vector<32x128xf32>, vector<8x128xf32> -> vector<8x128xf32>
    %c0_14 = arith.constant 0 : index
    %c0_15 = arith.constant 0 : index
    %c0_16 = arith.constant 0 : index
    %35 = vector.load %arg4[%c0_14, %c0_15, %c0_16] : memref<1x1x128xf32, #tpu.memory_space<vmem>>, vector<1x1x128xf32>
    %36 = vector.shape_cast %35 : vector<1x1x128xf32> to vector<1x128xf32>
    %37 = vector.broadcast %36 : vector<1x128xf32> to vector<8x128xf32>
    %38 = arith.addf %34, %37 : vector<8x128xf32>
    %cst_17 = arith.constant 0.000000e+00 : f32
    %39 = vector.broadcast %cst_17 : f32 to vector<8x128xf32>
    %40 = arith.maximumf %38, %39 : vector<8x128xf32>
    %c0_18 = arith.constant 0 : index
    %c0_19 = arith.constant 0 : index
    %c0_20 = arith.constant 0 : index
    %41 = vector.load %arg6[%c0_18, %c0_19, %c0_20] : memref<1x128x32xf32, #tpu.memory_space<vmem>>, vector<1x128x32xf32>
    %42 = vector.shape_cast %41 : vector<1x128x32xf32> to vector<128x32xf32>
    %cst_21 = arith.constant dense<0.000000e+00> : vector<8x32xf32>
    %43 = tpu.matmul %40, %42, %cst_21 {dimension_numbers = #tpu.dot_dimension_numbers<[1], [0], [0], [1], [0, 0, 1, 1], [], []>} : vector<8x128xf32>, vector<128x32xf32>, vector<8x32xf32> -> vector<8x32xf32>
    %44 = vector.broadcast %8 : vector<1x32xf32> to vector<8x32xf32>
    %45 = arith.addf %43, %44 : vector<8x32xf32>
    %46 = arith.addf %3, %45 : vector<8x32xf32>
    %c0_22 = arith.constant 0 : index
    %c0_23 = arith.constant 0 : index
    %47 = vector.load %arg10[%c0_22, %c0_23] : memref<8x32xf32, #tpu.memory_space<vmem>>, vector<8x32xf32>
    tpu.vector_store %arg10[%c0_22, %c0_23], %46 {strides = array<i32>} : memref<8x32xf32, #tpu.memory_space<vmem>>, vector<8x32xf32>,
    %c1_i32 = arith.constant 1 : i32
    %48 = arith.cmpi eq, %arg0, %c1_i32 : i32
    %49 = arith.extui %48 : i1 to i32
    %c0_i32_24 = arith.constant 0 : i32
    %50 = arith.cmpi ne, %49, %c0_i32_24 : i32
    scf.if %50 {
      %c0_25 = arith.constant 0 : index
      %c0_26 = arith.constant 0 : index
      %51 = vector.load %arg7[%c0_25, %c0_26] : memref<1x32xf32, #tpu.memory_space<vmem>>, vector<1x32xf32>
      %52 = vector.broadcast %51 : vector<1x32xf32> to vector<8x32xf32>
      %53 = arith.mulf %46, %52 : vector<8x32xf32>
      %cst_27 = arith.constant dense<0.000000e+00> : vector<8xf32>
      %54 = vector.multi_reduction <add>, %53, %cst_27 [1] : vector<8x32xf32> to vector<8xf32>
      %55 = vector.shape_cast %54 : vector<8xf32> to vector<8x1xf32>
      %c0_28 = arith.constant 0 : index
      %c0_29 = arith.constant 0 : index
      %56 = memref.load %arg8[%c0_28, %c0_29] : memref<1x1xf32, #tpu.memory_space<smem>>
      %57 = vector.broadcast %56 : f32 to vector<8x1xf32>
      %58 = arith.addf %55, %57 : vector<8x1xf32>
      %59 = vector.shape_cast %58 : vector<8x1xf32> to vector<8x1xf32>
      %60 = vector.broadcast %59 : vector<8x1xf32> to vector<8x128xf32>
      %c0_30 = arith.constant 0 : index
      %c0_31 = arith.constant 0 : index
      %61 = vector.load %arg9[%c0_30, %c0_31] : memref<8x128xf32, #tpu.memory_space<vmem>>, vector<8x128xf32>
      tpu.vector_store %arg9[%c0_30, %c0_31], %60 {strides = array<i32>} : memref<8x128xf32, #tpu.memory_space<vmem>>, vector<8x128xf32>,
    } else {
    }
    return
  }
  func.func @transform_0(%arg0: i32) -> (i32, i32) {
    %c0_i32 = arith.constant 0 : i32
    %c0_i32_0 = arith.constant 0 : i32
    %c0_i32_1 = arith.constant 0 : i32
    return %c0_i32, %c0_i32_0 : i32, i32
  }
  func.func @transform_1(%arg0: i32) -> (i32, i32) {
    %c0_i32 = arith.constant 0 : i32
    %c0_i32_0 = arith.constant 0 : i32
    %c0_i32_1 = arith.constant 0 : i32
    return %c0_i32, %c0_i32_0 : i32, i32
  }
  func.func @transform_2(%arg0: i32) -> (i32, i32, i32) {
    %c0_i32 = arith.constant 0 : i32
    %c0_i32_0 = arith.constant 0 : i32
    %c0_i32_1 = arith.constant 0 : i32
    return %arg0, %c0_i32, %c0_i32_0 : i32, i32, i32
  }
  func.func @transform_3(%arg0: i32) -> (i32, i32, i32) {
    %c0_i32 = arith.constant 0 : i32
    %c0_i32_0 = arith.constant 0 : i32
    %c0_i32_1 = arith.constant 0 : i32
    return %arg0, %c0_i32, %c0_i32_0 : i32, i32, i32
  }
  func.func @transform_4(%arg0: i32) -> (i32, i32, i32) {
    %c0_i32 = arith.constant 0 : i32
    %c0_i32_0 = arith.constant 0 : i32
    %c0_i32_1 = arith.constant 0 : i32
    return %arg0, %c0_i32, %c0_i32_0 : i32, i32, i32
  }
  func.func @transform_5(%arg0: i32) -> (i32, i32, i32) {
    %c0_i32 = arith.constant 0 : i32
    %c0_i32_0 = arith.constant 0 : i32
    %c0_i32_1 = arith.constant 0 : i32
    return %arg0, %c0_i32, %c0_i32_0 : i32, i32, i32
  }
  func.func @transform_6(%arg0: i32) -> (i32, i32) {
    %c0_i32 = arith.constant 0 : i32
    %c0_i32_0 = arith.constant 0 : i32
    %c0_i32_1 = arith.constant 0 : i32
    return %c0_i32, %c0_i32_0 : i32, i32
  }
  func.func @transform_7(%arg0: i32) -> (i32, i32) {
    %c0_i32 = arith.constant 0 : i32
    %c0_i32_0 = arith.constant 0 : i32
    %c0_i32_1 = arith.constant 0 : i32
    return %c0_i32, %c0_i32_0 : i32, i32
  }
  func.func @transform_8(%arg0: i32) -> (i32, i32) {
    %c0_i32 = arith.constant 0 : i32
    %c0_i32_0 = arith.constant 0 : i32
    %c0_i32_1 = arith.constant 0 : i32
    return %c0_i32, %c0_i32_0 : i32, i32
  }
}

</mosaic_0001>

<bundles_post_ra>
// kernel: tpu_custom_call.1
= control target key start
LH: loop header
LB: loop body
LE: loop exit
PB: predicated region body
PF: predicated region fallthrough
CT: control target
= control target key end

     0   :  { %s1086_s0 = inlined_call_operand.vmem [shape: f32[8,24], index: 0, kind: input, shape index: {}]   ;;  %s1087_s1 = inlined_call_operand.vmem [shape: f32[24,32], index: 1, kind: input, shape index: {}]   ;;  %s1088_s2 = inlined_call_operand.vmem [shape: f32[2,3,32], index: 2, kind: input, shape index: {}]   ;;  %s1089_s3 = inlined_call_operand.vmem [shape: f32[2,1,128], index: 3, kind: input, shape index: {}]   ;;  %s1090_s4 = inlined_call_operand.vmem [shape: f32[2,32,128], index: 4, kind: input, shape index: {}]   ;;  %s1091_s5 = inlined_call_operand.vmem [shape: f32[2,128,32], index: 5, kind: input, shape index: {}]   ;;  %s1092_s6 = inlined_call_operand.vmem [shape: f32[1,32], index: 6, kind: input, shape index: {}]   ;;  %s1093_s7 = inlined_call_operand.<no memory space> [shape: f32[1,1], index: 7, kind: input, shape index: {}]   ;;  %s1094_s8 = inlined_call_operand.hbm [shape: f32[8,128], index: 8, kind: output, shape index: {}]  }
   0x1   :  { %13 = sst [smem:[#allocation3]] %s1093_s7 }
   0x2   :  { %14 = vsyncpa [#allocation5], 0  ;;  %s956_s29 = smov 0  }
   0x3 LB: > { %s962_s30 = sadd.s32 4294967295, %s901_s29   ;;  %p747_p0 = scmp.ge.s32.totalorder %s901_s29, 1  ;;  %s901_s29 = sphi %s956_s29, %s20_s29  }
   0x4   : > { %p286_p1 = scmp.lt.s32.totalorder %s901_s29, 3 }
   0x6   : > { %p287_p2 = pnand %p747_p0, %p286_p1 }
   0x7   : > { %p327_p3 = scmp.lt.s32.totalorder (!%p287_p2), %s962_s30, 1  ;;  %p753_p4 = scmp.ne.s32.totalorder (!%p287_p2), %s962_s30, 0 }
   0x8   : > { %290 = sbr.rel (%p287_p2) target bundleno = 831 (0x33f), region = 52 }
   0xd   : > { %s968_s7 = scalar_select %p327_p3, %s962_s30, 1 }
   0xe   : > { %347 = sbr.rel (%p753_p4) target bundleno = 221 (0xdd), region = 56 }
   0xf   : > { %s748_s9 = sshll.u32 %s968_s7, 2  ;;  %s333_s12 = scalar_lea.vmem %s1089_s3, %s968_s7 }
  0x10   : > { %s978_s15 = scalar_lea.vmem %s1088_s2, %s748_s9  ;;  %s763_s16 = sshll.u32 %s968_s7, 5 }
  0x11   : > { %s984_s19 = scalar_lea.vmem %s1090_s4, %s763_s16  ;;  %s764_s20 = sshll.u32 %s968_s7, 7 }
  0x12   : > { %s990_s23 = scalar_lea.vmem %s1091_s5, %s764_s20 }
  0x13   : > { %v351_v0 = vld [vmem:[%s1087_s1 + $0x10] sm:$0xff]  ;;  %v903_v1 = vmov 0.0   ;;  %v350_v2 = vld [vmem:[%s1087_s1 + $0x8] sm:$0xff]  ;;  %vm904_vm0 = vmmov 0   ;;  %v349_v3 = vld [vmem:[%s1087_s1] sm:$0xff]  ;;  %vm352_vm1 = vcmask 195584  }
  0x14   : > { %791 = vmatprep.subr.mxu0 %v903_v1  ;;  %797 = vmatprep.mubr.msk.f32.mxu0 %vm904_vm0, %v903_v1  ;;  %v348_v4 = vld [vmem:[%s1086_s0] sm:$0xff]  ;;  %vm426_vm2 = vcmask 261120  }
  0x15   : > { %792 = vmatpush3.msra.mxu0 %v351_v0 }
  0x16   : > { %793 = vmatprep.subr.mxu0 %v903_v1 }
  0x17   : > { %794 = vmatpush3.msra.mxu0 %v350_v2 }
  0x18   : > { %795 = vmatprep.subr.mxu0 %v903_v1 }
  0x19   : > { %796 = vmatpush3.msra.mxu0 %v349_v3 }
  0x1a   : > { %798 = vmatmul.mubr.msk.f32.vlgmr.msra.gmra.mxu0 %vm352_vm1, %v348_v4 }
  0xda   : > { %v422_v5 = vpop.f32.mrf.mxu0 }
  0xdb   : > { %427 = vst.msk [vmem:[#allocation2] sm:$0xff] %vm426_vm2, %v422_v5 }
  0xdc   : > { %v799_v6 = vpop.f32.mrf.mxu0 }
  0xdd PF: > { %v472_v7 = vld [vmem:[%s984_s19 + $0x18] sm:$0xff]  ;;  %vm430_vm3 = vcmask 261120   ;;  %v905_v8 = vmov 0.0   ;;  %v471_v9 = vld [vmem:[%s984_s19 + $0x10] sm:$0xff]  ;;  %vm906_vm4 = vmmov 0   ;;  %v470_v15 = vld [vmem:[%s984_s19 + $0x8] sm:$0xff]  ;;  %v459_v47 = vlaneseq }
  0xde   : > { %800 = vmatprep.subr.mxu0 %v905_v8  ;;  %808 = vmatprep.mubr.msk.f32.mxu0 %vm906_vm4, %v905_v8  ;;  %v569_v13 = vld [vmem:[%s990_s23 + $0x78] sm:$0xff]  ;;  %v568_v14 = vld [vmem:[%s990_s23 + $0x70] sm:$0xff]  ;;  %v567_v18 = vld [vmem:[%s990_s23 + $0x68] sm:$0xff]  ;;  %p757_p5 = scmp.ne.s32.totalorder %s962_s30, 1 }
  0xdf   : > { %801 = vmatpush3.msra.mxu0 %v472_v7  ;;  %811 = vmatprep.subr.mxu1 %v905_v8  ;;  %v469_v19 = vld [vmem:[%s984_s19] sm:$0xff]  ;;  %v565_v25 = vld [vmem:[%s990_s23 + $0x58] sm:$0xff]  ;;  %v564_v28 = vld [vmem:[%s990_s23 + $0x50] sm:$0xff]  ;;  %v460_v48 = vshrl.u32 %v459_v47, 7 }
  0xe0   : > { %802 = vmatprep.subr.mxu0 %v905_v8  ;;  %812 = vmatpush3.msra.mxu1 %v569_v13  ;;  %v566_v22 = vld [vmem:[%s990_s23 + $0x60] sm:$0xff]  ;;  %v563_v31 = vld [vmem:[%s990_s23 + $0x48] sm:$0xff]  ;;  %v561_v37 = vld [vmem:[%s990_s23 + $0x38] sm:$0xff] }
  0xe1   : > { %803 = vmatpush3.msra.mxu0 %v471_v9  ;;  %813 = vmatprep.subr.mxu1 %v905_v8  ;;  %v562_v34 = vld [vmem:[%s990_s23 + $0x40] sm:$0xff]  ;;  %v560_v40 = vld [vmem:[%s990_s23 + $0x30] sm:$0xff]  ;;  %v559_v42 = vld [vmem:[%s990_s23 + $0x28] sm:$0xff]  ;;  %v461_v50 = vsub.s32 0, %v460_v48  ;;  %v466_v56 = vsub.s32 1, %v460_v48  ;;  %v572_v5 = vsub.s32 2, %v460_v48 }
  0xe2   : > { %v1010_v10 = vld [vmem:[#allocation2] sm:$0xff]  ;;  %804 = vmatprep.subr.mxu0 %v905_v8  ;;  %814 = vmatpush3.msra.mxu1 %v568_v14  ;;  %v557_v46 = vld [vmem:[%s990_s23 + $0x18] sm:$0xff]  ;;  %v556_v61 = vld [vmem:[%s990_s23 + $0x10] sm:$0xff] }
  0xe3   : > { %v431_v11 = vsel %vm430_vm3, %v1010_v10, 0.0  ;;  %v438_v12 = vmul.f32 %v1010_v10, %v1010_v10  ;;  %805 = vmatpush3.msra.mxu0 %v470_v15  ;;  %815 = vmatprep.subr.mxu1 %v905_v8  ;;  %v558_v44 = vld [vmem:[%s990_s23 + $0x20] sm:$0xff]  ;;  %v555_v62 = vld [vmem:[%s990_s23 + $0x8] sm:$0xff] }
  0xe4   : > { %v432_v16 = vrot.slane %v431_v11, 4  ;;  %806 = vmatprep.subr.mxu0 %v905_v8  ;;  %816 = vmatpush3.msra.mxu1 %v567_v18  ;;  %v429_v49 = vld [vmem:[%s978_s15] sm:$0x7] }
  0xe5   : > { %v439_v17 = vsel %vm430_vm3, %v438_v12, 0.0  ;;  %807 = vmatpush3.msra.mxu0 %v469_v19  ;;  %817 = vmatprep.subr.mxu1 %v905_v8  ;;  %v554_v63 = vld [vmem:[%s990_s23] sm:$0xff]  ;;  %v573_v6 = vrot.slane %v429_v49, %v572_v5 }
  0xe6   : > { %v433_v20 = vadd.f32 %v432_v16, %v431_v11  ;;  %v440_v21 = vrot.slane %v439_v17, 4  ;;  %818 = vmatpush3.msra.mxu1 %v566_v22  ;;  %843 = vmatprep.mubr.msk.f32.mxu1 %vm906_vm4, %v905_v8  ;;  %v755_v0 = vld [vmem:[%s333_s12] ss:$0 sm:$0xff]  ;;  %s661_s12 = sld [smem:[#allocation3]] (!%p757_p5) }
  0xe7   : > { %819 = vmatprep.subr.mxu1 %v905_v8 }
  0xe8   : > { %v434_v23 = vrot.slane %v433_v20, 2  ;;  %v441_v24 = vadd.f32 %v440_v21, %v439_v17  ;;  %820 = vmatpush3.msra.mxu1 %v565_v25 }
  0xe9   : > { %821 = vmatprep.subr.mxu1 %v905_v8 }
  0xea   : > { %v435_v26 = vadd.f32 %v434_v23, %v433_v20  ;;  %v442_v27 = vrot.slane %v441_v24, 2  ;;  %822 = vmatpush3.msra.mxu1 %v564_v28 }
  0xeb   : > { %823 = vmatprep.subr.mxu1 %v905_v8 }
  0xec   : > { %v436_v29 = vrot.slane %v435_v26, 1  ;;  %v443_v30 = vadd.f32 %v442_v27, %v441_v24  ;;  %824 = vmatpush3.msra.mxu1 %v563_v31 }
  0xed   : > { %825 = vmatprep.subr.mxu1 %v905_v8 }
  0xee   : > { %v437_v32 = vadd.f32 %v436_v29, %v435_v26  ;;  %v444_v33 = vrot.slane %v443_v30, 1  ;;  %826 = vmatpush3.msra.mxu1 %v562_v34 }
  0xef   : > { %827 = vmatprep.subr.mxu1 %v905_v8 }
  0xf0   : > { %v445_v35 = vadd.f32 %v444_v33, %v443_v30  ;;  %v446_v36 = vmul.f32 0.125, %v437_v32  ;;  %828 = vmatpush3.msra.mxu1 %v561_v37 }
  0xf1   : > { %829 = vmatprep.subr.mxu1 %v905_v8 }
  0xf2   : > { %v447_v38 = vmul.f32 0.125, %v445_v35  ;;  %v448_v39 = vmul.f32 %v446_v36, %v446_v36  ;;  %830 = vmatpush3.msra.mxu1 %v560_v40 }
  0xf3   : > { %831 = vmatprep.subr.mxu1 %v905_v8 }
  0xf4   : > { %v449_v41 = vsub.f32 %v447_v38, %v448_v39  ;;  %832 = vmatpush3.msra.mxu1 %v559_v42 }
  0xf5   : > { %833 = vmatprep.subr.mxu1 %v905_v8 }
  0xf6   : > { %v450_v43 = vmax.f32 %v449_v41, 0.0  ;;  %834 = vmatpush3.msra.mxu1 %v558_v44 }
  0xf7   : > { %835 = vmatprep.subr.mxu1 %v905_v8 }
  0xf8   : > { %v451_v45 = vadd.f32 1e-05, %v450_v43  ;;  %836 = vmatpush3.msra.mxu1 %v557_v46 }
  0xf9   : > { %837 = vmatprep.subr.mxu1 %v905_v8 }
  0xfa   : > { %865 = vrsqrt.f32 %v451_v45  ;;  %838 = vmatpush3.msra.mxu1 %v556_v61 }
  0xfb   : > { %839 = vmatprep.subr.mxu1 %v905_v8 }
  0xfc   : > { %840 = vmatpush3.msra.mxu1 %v555_v62 }
  0xfd   : > { %841 = vmatprep.subr.mxu1 %v905_v8 }
  0xfe   : > { %842 = vmatpush3.msra.mxu1 %v554_v63 }
 0x107   : > { %v866_v51 = vpop.eup %865 }
 0x108   : > { %v453_v52 = vmul.f32 %v866_v51, %v429_v49 }
 0x10a   : > { %v454_v53 = vmul.f32 %v453_v52, %v446_v36  ;;  %v462_v54 = vrot.slane %v453_v52, %v461_v50 }
 0x10c   : > { %v456_v55 = vrot.slane %v454_v53, 7  ;;  %v463_v58 = vmul.f32 %v462_v54, %v1010_v10 }
 0x10e   : > { %v458_v57 = vsub.f32 %v429_v49, %v456_v55 }
 0x110   : > { %v467_v59 = vrot.slane %v458_v57, %v466_v56 }
 0x112   : > { %v468_v60 = vadd.f32 %v467_v59, %v463_v58 }
 0x114   : > { %809 = vmatmul.mubr.msk.f32.vlgmr.msra.gmra.mxu0 %vm430_vm3, %v468_v60 }
 0x1d4   : > { %v549_v1 = vpop.f32.mrf.mxu0 }
 0x1d5   : > { %v550_v2 = vadd.f32 %v755_v0, %v549_v1 }
 0x1d6   : > { %v810_v3 = vpop.f32.mrf.mxu0 }
 0x1d7   : > { %v553_v4 = vmax.f32 %v550_v2, 0.0 }
 0x1d9   : > { %844 = vmatmul.mubr.f32.vlgmr.msra.gmra.mxu1 %v553_v4 }
 0x299   : > { %v640_v7 = vpop.f32.mrf.mxu1 }
 0x29a   : > { %v641_v9 = vadd.f32 %v640_v7, %v573_v6  ;;  %649 = sbr.rel (%p757_p5) target bundleno = 816 (0x330), region = 60 }
 0x29b   : > { %v845_v11 = vpop.f32.mrf.mxu1 }
 0x29c   : > { %v644_v12 = vadd.f32 %v641_v9, %v1010_v10 }
 0x29e   : > { %645 = vst.msk [vmem:[#allocation2] sm:$0xff] %vm430_vm3, %v644_v12 }
 0x29f   : > { %v758_v8 = vld [vmem:[%s1092_s6] ss:$0 sm:$0xff]  ;;  %v662_v15 = vstv %s661_s12 }
 0x2a0   : > { %v657_v13 = vmul.f32 %v758_v8, %v644_v12 }
 0x2a2   : > { %v658_v14 = vsel %vm430_vm3, %v657_v13, 0.0 }
 0x2a3   : > { %659 = vadd.xlane.f32.xlu0 %v658_v14 }
 0x32c   : > { %v660_v16 = vpop.xlane.xlu0 %659 }
 0x32d   : > { %v663_v17 = vadd.f32 %v662_v15, %v660_v16 }
 0x32f   : > { %664 = vst [vmem:[#allocation4] sm:$0xff] %v663_v17 }
 0x330 PF: > { %p850_p6 = scmp.eq.s32.totalorder %s962_s30, 1  ;;  %s907_s16 = smov [#allocation4]  }
 0x331   : > { %s672_s17 = sshll.u32 %s907_s16, 4  ;;  %s673_s17 = int_to_ptr.vmem [resolvable:$true] %s672_s17 }
 0x332   : > { %s867_s18 = scalar_lea.vmem %s673_s17, 128  ;;  %p874_p10 = scmp.lt.s32.totalorder %s673_s17, %s673_s17 }
 0x333   : > { %p868_p7 = scmp.ne.s32.totalorder %s673_s17, %s867_s18  ;;  %p875_p11 = scmp.lt.s32.totalorder %s867_s18, %s867_s18 }
 0x335   : > { %p869_p8 = pnand %p868_p7, %p850_p6  ;;  %p876_p12 = por %p875_p11, %p874_p10 }
 0x337   : > { %p870_p9 = pneg %p869_p8 }
 0x339   : > { %p877_p13 = pnand %p876_p12, %p870_p9 }
 0x33b   : > { %880 = shalt.err (!%p877_p13)
}
 0x33c   : > { %847 = dma.vmem_to_hbm [thread:$0]  (%p850_p6), %s673_s17, 128, %s1094_s8, [#allocation5]  }
 0x33d   : > { %896 = dma.done.wait (%p850_p6), [#allocation5], 128  }
 0x33e   : > { %898 = vsyncadd (%p850_p6), [#allocation5], 4294967168 }
 0x33f PF: > { %s20_s29 = sadd.s32 1, %s901_s29  }
 0x340   : > { %p17_p0 = scmp.ge.s32.totalorder %s20_s29, 4  }
 0x342   :  { %19 = sbr.rel (!%p17_p0) target bundleno = 3 (0x3), region = 96 }
 0x347   :  { %685 = vsyncpa [#allocation5], 1 }
 0x348   :  { %687 = vsyncpa [#allocation5 + $0x1], 1 }

</bundles_post_ra>
